<compile_context>
chip_gen: v7x
topology: tpu7x:2x2x1
jax: 0.10.0
libtpu: 0.0.40
codegen_flags: <defaults>
</compile_context>

<pallas_src>
import functools

import jax
import jax.numpy as jnp
from jax import lax
from jax.experimental import pallas as pl
from jax.experimental.pallas import tpu as pltpu

_LANE = 128
_SUBLANE = 8


def _round_up(x, m):
    return (x + m - 1) // m * m


def _gather_kernel(ids_smem, table_hbm, out_ref, row_buf, sem, *, nbuf, vocab_size):
    """DMA row-gather for one tile of tokens.

    ids_smem : (N_pad,)          int32  all token ids (SMEM, scalar prefetch)
    table_hbm: (V, D_pad)        f32    embedding table, left in HBM (pl.ANY)
    out_ref  : (T, D_pad)        f32    output tile (VMEM, pipelined)
    row_buf  : (T, D_pad)        f32    VMEM scratch that the row DMAs land in
    sem      : (nbuf,)           DMA semaphores (ring of in-flight row copies)
    """
    T = out_ref.shape[0]
    base = pl.program_id(0) * T

    def _copy(t, slot):
        # Clamp so a bad id can never DMA outside the table (PyTorch raises;
        # here we clamp -- see module docstring).
        row = jnp.clip(ids_smem[base + t], 0, vocab_size - 1)
        return pltpu.make_async_copy(
            table_hbm.at[pl.ds(row, 1), :],
            row_buf.at[pl.ds(t, 1), :],
            sem.at[slot],
        )

    def _wait(t, slot):
        # Only the shapes matter for the wait amount; src index is irrelevant.
        pltpu.make_async_copy(
            table_hbm.at[pl.ds(0, 1), :],
            row_buf.at[pl.ds(t, 1), :],
            sem.at[slot],
        ).wait()

    n_pro = min(nbuf, T)  # static

    # Prologue: fill the ring with the first n_pro row copies.
    def _prologue(t, carry):
        _copy(t, t % nbuf).start()
        return carry

    lax.fori_loop(0, n_pro, _prologue, 0)

    # Steady state: wait on the oldest in-flight row, reuse its slot for row t.
    def _steady(t, carry):
        _wait(t - nbuf, (t - nbuf) % nbuf)
        _copy(t, t % nbuf).start()
        return carry

    lax.fori_loop(n_pro, T, _steady, 0)

    # Drain the last n_pro outstanding copies.
    def _drain(t, carry):
        _wait(t, t % nbuf)
        return carry

    lax.fori_loop(T - n_pro, T, _drain, 0)

    # Lane-dense, unmasked store into the pipelined output block.
    out_ref[...] = row_buf[...]


def global_embedding(ids, table, *, token_tile=256, nbuf=8):
    """Forward of GlobalEmbedding.

    ids  : (B, S) integer token ids in [0, V)
    table: (V, D) float32 embedding table (row 0 == 0 for padding_idx=0)
    returns (B, S, D) float32
    """
    B, S = ids.shape
    V, D = table.shape
    N = B * S

    # Lane-dense output: pad embedding dim up to a multiple of 128.
    # (In a real model the table should be stored pre-padded to avoid this copy.)
    D_pad = _round_up(D, _LANE)
    if D_pad != D:
        table = jnp.pad(table, ((0, 0), (0, D_pad - D)))

    # Token tiling: multiple of 8 sublanes; pad N to a whole number of tiles.
    token_tile = min(token_tile, _round_up(N, _SUBLANE))
    token_tile = _round_up(token_tile, _SUBLANE)
    N_pad = _round_up(N, token_tile)
    nbuf = max(1, min(nbuf, token_tile))

    ids_flat = ids.reshape(-1).astype(jnp.int32)
    if N_pad != N:
        # Pad with the padding id (row 0 is the zero row); sliced off below.
        ids_flat = jnp.pad(ids_flat, (0, N_pad - N))

    kernel = functools.partial(_gather_kernel, nbuf=nbuf, vocab_size=V)

    out = pl.pallas_call(
        kernel,
        out_shape=jax.ShapeDtypeStruct((N_pad, D_pad), table.dtype),
        grid_spec=pltpu.PrefetchScalarGridSpec(
            num_scalar_prefetch=1,                         # ids -> SMEM
            grid=(N_pad // token_tile,),
            in_specs=[pl.BlockSpec(memory_space=pl.ANY)],  # table stays in HBM
            out_specs=pl.BlockSpec((token_tile, D_pad), lambda i, ids: (i, 0)),
            scratch_shapes=[
                pltpu.VMEM((token_tile, D_pad), table.dtype),
                pltpu.SemaphoreType.DMA((nbuf,)),
            ],
        ),
        compiler_params=pltpu.CompilerParams(
            dimension_semantics=("parallel",)),
    )(ids_flat, table)

    return out[:N, :D].reshape(B, S, D)


def init_embedding_table(key, vocab_size, embedding_dim):
    """Mirror nn.Embedding(padding_idx=0): N(0,1) weights with row 0 zeroed.
    Note: padding semantics rely on row 0 staying zero (PyTorch enforces this
    in the module; any table update must keep row 0 == 0)."""
    w = jax.random.normal(key, (vocab_size, embedding_dim), dtype=jnp.float32)
    return w.at[0].set(0.0)


if __name__ == "__main__":
    key = jax.random.PRNGKey(0)
    k_ids, k_tab, k_ids2, k_tab2 = jax.random.split(key, 4)

    # Small demo shapes consistent with the module.
    vocab_size, embedding_dim = 64, 32
    B, S = 2, 8

    table = init_embedding_table(k_tab, vocab_size, embedding_dim)
    ids = jax.random.randint(k_ids, (B, S), 0, vocab_size, dtype=jnp.int32)
    ids = ids.at[0, 0].set(0)  # exercise padding_idx=0

    out = jax.block_until_ready(global_embedding(ids, table))
    ref = jnp.take(table, ids, axis=0)
    assert out.shape == (B, S, embedding_dim)
    assert jnp.allclose(out, ref), "mismatch vs reference (small case)"
    assert jnp.all(out[0, 0] == 0.0), "padding_idx=0 must map to zeros"

    # Second config: multi-tile grid + ragged-N padding + D padding path.
    V2, D2, B2, S2 = 40, 48, 2, 160            # N = 320 -> 2 tiles of 256 (padded)
    table2 = init_embedding_table(k_tab2, V2, D2)
    ids2 = jax.random.randint(k_ids2, (B2, S2), 0, V2, dtype=jnp.int32)
    out2 = jax.block_until_ready(global_embedding(ids2, table2))
    ref2 = jnp.take(table2, ids2, axis=0)
    assert out2.shape == (B2, S2, D2)
    assert jnp.allclose(out2, ref2), "mismatch vs reference (multi-tile case)"

    print("KERNEL_OK")
</pallas_src>

<mosaic_0001>
module attributes {stable_mosaic.version = 11 : i64} {
  func.func @_gather_kernel(%arg0: i32, %arg1: memref<16xi32, #tpu.memory_space<smem>>, %arg2: memref<64x128xf32, #tpu.memory_space<any>>, %arg3: memref<16x128xf32, #tpu.memory_space<vmem>>, %arg4: memref<16x128xf32, #tpu.memory_space<vmem>>, %arg5: memref<8x!tpu.dma_semaphore, #tpu.memory_space<semaphore_mem>>) attributes {dimension_semantics = [#tpu.dimension_semantics<parallel>], iteration_bounds = array<i64: 1>, scalar_prefetch = 1 : i64, scratch_operands = 2 : i64, tpu.core_type = #tpu.core_type<tc>, window_params = [{}, {transform_indices = @transform_1, window_bounds = array<i64: 16, 128>}]} {
    %c16_i32 = arith.constant 16 : i32
    %0 = arith.muli %arg0, %c16_i32 : i32
    %c0_i32 = arith.constant 0 : i32
    %c8_i32 = arith.constant 8 : i32
    %1 = arith.addi %c0_i32, %c8_i32 : i32
    %c1_i32 = arith.constant 1 : i32
    scf.for %arg6 = %c0_i32 to %1 step %c1_i32  : i32 {
      %c8_i32_12 = arith.constant 8 : i32
      %c0_i32_13 = arith.constant 0 : i32
      %6 = arith.cmpi eq, %c8_i32_12, %c0_i32_13 : i32
      %c1_i32_14 = arith.constant 1 : i32
      %7 = arith.select %6, %c1_i32_14, %c8_i32_12 : i32
      %8 = arith.remsi %arg6, %7 : i32
      %c0_i32_15 = arith.constant 0 : i32
      %9 = arith.cmpi ne, %8, %c0_i32_15 : i32
      %c0_i32_16 = arith.constant 0 : i32
      %10 = arith.cmpi slt, %8, %c0_i32_16 : i32
      %c0_i32_17 = arith.constant 0 : i32
      %11 = arith.cmpi slt, %7, %c0_i32_17 : i32
      %12 = arith.xori %10, %11 : i1
      %13 = arith.andi %12, %9 : i1
      %14 = arith.addi %8, %7 : i32
      %15 = arith.select %13, %14, %8 : i32
      %16 = arith.addi %0, %arg6 : i32
      %17 = arith.index_cast %16 : i32 to index
      %18 = memref.load %arg1[%17] : memref<16xi32, #tpu.memory_space<smem>>
      %c0_i32_18 = arith.constant 0 : i32
      %c63_i32 = arith.constant 63 : i32
      %19 = arith.maxsi %c0_i32_18, %18 : i32
      %20 = arith.minsi %c63_i32, %19 : i32
      %c0_i32_19 = arith.constant 0 : i32
      %21 = tpu.memref_slice %arg2[%20, %c0_i32_19] : memref<64x128xf32, #tpu.memory_space<any>> -> memref<1x128xf32, #tpu.memory_space<any>>
      %c0_i32_20 = arith.constant 0 : i32
      %22 = tpu.memref_slice %arg4[%arg6, %c0_i32_20] : memref<16x128xf32, #tpu.memory_space<vmem>> -> memref<1x128xf32, #tpu.memory_space<vmem>>
      %23 = tpu.memref_slice %arg5[%15] : memref<8x!tpu.dma_semaphore, #tpu.memory_space<semaphore_mem>> -> memref<1x!tpu.dma_semaphore, #tpu.memory_space<semaphore_mem>>
      %24 = tpu.memref_squeeze %23 : memref<1x!tpu.dma_semaphore, #tpu.memory_space<semaphore_mem>> -> memref<!tpu.dma_semaphore, #tpu.memory_space<semaphore_mem>>
      tpu.enqueue_dma source(%21 : memref<1x128xf32, #tpu.memory_space<any>>) target(%22 : memref<1x128xf32, #tpu.memory_space<vmem>>) target_semaphore(%24 : memref<!tpu.dma_semaphore, #tpu.memory_space<semaphore_mem>>)
    }
    %c8_i32_0 = arith.constant 8 : i32
    %c8_i32_1 = arith.constant 8 : i32
    %c8_i32_2 = arith.constant 8 : i32
    %2 = arith.addi %c8_i32_1, %c8_i32_2 : i32
    %c1_i32_3 = arith.constant 1 : i32
    scf.for %arg6 = %c8_i32_1 to %2 step %c1_i32_3  : i32 {
      %c8_i32_12 = arith.constant 8 : i32
      %6 = arith.subi %arg6, %c8_i32_12 : i32
      %c8_i32_13 = arith.constant 8 : i32
      %7 = arith.subi %arg6, %c8_i32_13 : i32
      %c8_i32_14 = arith.constant 8 : i32
      %c0_i32_15 = arith.constant 0 : i32
      %8 = arith.cmpi eq, %c8_i32_14, %c0_i32_15 : i32
      %c1_i32_16 = arith.constant 1 : i32
      %9 = arith.select %8, %c1_i32_16, %c8_i32_14 : i32
      %10 = arith.remsi %7, %9 : i32
      %c0_i32_17 = arith.constant 0 : i32
      %11 = arith.cmpi ne, %10, %c0_i32_17 : i32
      %c0_i32_18 = arith.constant 0 : i32
      %12 = arith.cmpi slt, %10, %c0_i32_18 : i32
      %c0_i32_19 = arith.constant 0 : i32
      %13 = arith.cmpi slt, %9, %c0_i32_19 : i32
      %14 = arith.xori %12, %13 : i1
      %15 = arith.andi %14, %11 : i1
      %16 = arith.addi %10, %9 : i32
      %17 = arith.select %15, %16, %10 : i32
      %c0_i32_20 = arith.constant 0 : i32
      %c0_i32_21 = arith.constant 0 : i32
      %18 = tpu.memref_slice %arg2[%c0_i32_20, %c0_i32_21] : memref<64x128xf32, #tpu.memory_space<any>> -> memref<1x128xf32, #tpu.memory_space<any>>
      %c0_i32_22 = arith.constant 0 : i32
      %19 = tpu.memref_slice %arg4[%6, %c0_i32_22] : memref<16x128xf32, #tpu.memory_space<vmem>> -> memref<1x128xf32, #tpu.memory_space<vmem>>
      %20 = tpu.memref_slice %arg5[%17] : memref<8x!tpu.dma_semaphore, #tpu.memory_space<semaphore_mem>> -> memref<1x!tpu.dma_semaphore, #tpu.memory_space<semaphore_mem>>
      %21 = tpu.memref_squeeze %20 : memref<1x!tpu.dma_semaphore, #tpu.memory_space<semaphore_mem>> -> memref<!tpu.dma_semaphore, #tpu.memory_space<semaphore_mem>>
      tpu.wait_dma2 semaphore(%21 : memref<!tpu.dma_semaphore, #tpu.memory_space<semaphore_mem>>) src(%18 : memref<1x128xf32, #tpu.memory_space<any>>) dst(%19 : memref<1x128xf32, #tpu.memory_space<vmem>>)
      %c8_i32_23 = arith.constant 8 : i32
      %c0_i32_24 = arith.constant 0 : i32
      %22 = arith.cmpi eq, %c8_i32_23, %c0_i32_24 : i32
      %c1_i32_25 = arith.constant 1 : i32
      %23 = arith.select %22, %c1_i32_25, %c8_i32_23 : i32
      %24 = arith.remsi %arg6, %23 : i32
      %c0_i32_26 = arith.constant 0 : i32
      %25 = arith.cmpi ne, %24, %c0_i32_26 : i32
      %c0_i32_27 = arith.constant 0 : i32
      %26 = arith.cmpi slt, %24, %c0_i32_27 : i32
      %c0_i32_28 = arith.constant 0 : i32
      %27 = arith.cmpi slt, %23, %c0_i32_28 : i32
      %28 = arith.xori %26, %27 : i1
      %29 = arith.andi %28, %25 : i1
      %30 = arith.addi %24, %23 : i32
      %31 = arith.select %29, %30, %24 : i32
      %32 = arith.addi %0, %arg6 : i32
      %33 = arith.index_cast %32 : i32 to index
      %34 = memref.load %arg1[%33] : memref<16xi32, #tpu.memory_space<smem>>
      %c0_i32_29 = arith.constant 0 : i32
      %c63_i32 = arith.constant 63 : i32
      %35 = arith.maxsi %c0_i32_29, %34 : i32
      %36 = arith.minsi %c63_i32, %35 : i32
      %c0_i32_30 = arith.constant 0 : i32
      %37 = tpu.memref_slice %arg2[%36, %c0_i32_30] : memref<64x128xf32, #tpu.memory_space<any>> -> memref<1x128xf32, #tpu.memory_space<any>>
      %c0_i32_31 = arith.constant 0 : i32
      %38 = tpu.memref_slice %arg4[%arg6, %c0_i32_31] : memref<16x128xf32, #tpu.memory_space<vmem>> -> memref<1x128xf32, #tpu.memory_space<vmem>>
      %39 = tpu.memref_slice %arg5[%31] : memref<8x!tpu.dma_semaphore, #tpu.memory_space<semaphore_mem>> -> memref<1x!tpu.dma_semaphore, #tpu.memory_space<semaphore_mem>>
      %40 = tpu.memref_squeeze %39 : memref<1x!tpu.dma_semaphore, #tpu.memory_space<semaphore_mem>> -> memref<!tpu.dma_semaphore, #tpu.memory_space<semaphore_mem>>
      tpu.enqueue_dma source(%37 : memref<1x128xf32, #tpu.memory_space<any>>) target(%38 : memref<1x128xf32, #tpu.memory_space<vmem>>) target_semaphore(%40 : memref<!tpu.dma_semaphore, #tpu.memory_space<semaphore_mem>>)
    }
    %c8_i32_4 = arith.constant 8 : i32
    %c8_i32_5 = arith.constant 8 : i32
    %c8_i32_6 = arith.constant 8 : i32
    %3 = arith.addi %c8_i32_5, %c8_i32_6 : i32
    %c1_i32_7 = arith.constant 1 : i32
    scf.for %arg6 = %c8_i32_5 to %3 step %c1_i32_7  : i32 {
      %c8_i32_12 = arith.constant 8 : i32
      %c0_i32_13 = arith.constant 0 : i32
      %6 = arith.cmpi eq, %c8_i32_12, %c0_i32_13 : i32
      %c1_i32_14 = arith.constant 1 : i32
      %7 = arith.select %6, %c1_i32_14, %c8_i32_12 : i32
      %8 = arith.remsi %arg6, %7 : i32
      %c0_i32_15 = arith.constant 0 : i32
      %9 = arith.cmpi ne, %8, %c0_i32_15 : i32
      %c0_i32_16 = arith.constant 0 : i32
      %10 = arith.cmpi slt, %8, %c0_i32_16 : i32
      %c0_i32_17 = arith.constant 0 : i32
      %11 = arith.cmpi slt, %7, %c0_i32_17 : i32
      %12 = arith.xori %10, %11 : i1
      %13 = arith.andi %12, %9 : i1
      %14 = arith.addi %8, %7 : i32
      %15 = arith.select %13, %14, %8 : i32
      %c0_i32_18 = arith.constant 0 : i32
      %c0_i32_19 = arith.constant 0 : i32
      %16 = tpu.memref_slice %arg2[%c0_i32_18, %c0_i32_19] : memref<64x128xf32, #tpu.memory_space<any>> -> memref<1x128xf32, #tpu.memory_space<any>>
      %c0_i32_20 = arith.constant 0 : i32
      %17 = tpu.memref_slice %arg4[%arg6, %c0_i32_20] : memref<16x128xf32, #tpu.memory_space<vmem>> -> memref<1x128xf32, #tpu.memory_space<vmem>>
      %18 = tpu.memref_slice %arg5[%15] : memref<8x!tpu.dma_semaphore, #tpu.memory_space<semaphore_mem>> -> memref<1x!tpu.dma_semaphore, #tpu.memory_space<semaphore_mem>>
      %19 = tpu.memref_squeeze %18 : memref<1x!tpu.dma_semaphore, #tpu.memory_space<semaphore_mem>> -> memref<!tpu.dma_semaphore, #tpu.memory_space<semaphore_mem>>
      tpu.wait_dma2 semaphore(%19 : memref<!tpu.dma_semaphore, #tpu.memory_space<semaphore_mem>>) src(%16 : memref<1x128xf32, #tpu.memory_space<any>>) dst(%17 : memref<1x128xf32, #tpu.memory_space<vmem>>)
    }
    %c8_i32_8 = arith.constant 8 : i32
    %c0 = arith.constant 0 : index
    %c0_9 = arith.constant 0 : index
    %4 = vector.load %arg4[%c0, %c0_9] : memref<16x128xf32, #tpu.memory_space<vmem>>, vector<16x128xf32>
    %c0_10 = arith.constant 0 : index
    %c0_11 = arith.constant 0 : index
    %5 = vector.load %arg3[%c0_10, %c0_11] : memref<16x128xf32, #tpu.memory_space<vmem>>, vector<16x128xf32>
    tpu.vector_store %arg3[%c0_10, %c0_11], %4 {strides = array<i32>} : memref<16x128xf32, #tpu.memory_space<vmem>>, vector<16x128xf32>,
    return
  }
  func.func @transform_1(%arg0: i32, %arg1: memref<16xi32, #tpu.memory_space<smem>>) -> (i32, i32) {
    %c0_i32 = arith.constant 0 : i32
    %c0_i32_0 = arith.constant 0 : i32
    return %arg0, %c0_i32 : i32, i32
  }
}

</mosaic_0001>

<bundles_post_ra>
// kernel: tpu_custom_call.1
= control target key start
LH: loop header
LB: loop body
LE: loop exit
PB: predicated region body
PF: predicated region fallthrough
CT: control target
= control target key end

     0   :  { %s513_s0 = inlined_call_operand.hbm [shape: s32[16], index: 0, kind: input, shape index: {}]   ;;  %s514_s1 = inlined_call_operand.hbm [shape: f32[64,128], index: 1, kind: input, shape index: {}]   ;;  %s515_s2 = inlined_call_operand.hbm [shape: f32[16,128], index: 2, kind: output, shape index: {}]  }
   0x1   :  { %s295_s11 = scalar_lea.hbm %s513_s0, 16 }
   0x2   :  { %p296_p0 = scmp.ne.s32.totalorder %s513_s0, %s295_s11  ;;  %p299_p1 = scmp.lt.u32.totalorder %s295_s11, %s513_s0 }
   0x4   :  { %p301_p2 = pnand %p299_p1, %p296_p0 }
   0x6   :  { %304 = shalt.err (!%p301_p2)  }
   0x7   :  { %s407_s16 = smov [#allocation5]  }
   0x8   :  { %8 = dma.hbm_to_smem %s513_s0, 16, %s407_s16, [#allocation4] }
   0x9   :  { %387 = dma.done.wait [#allocation4], 16 }
   0xa   :  { %388 = vsyncadd [#allocation4], 4294967280 }
   0xb   :  { %10 = sfence }
   0xc   :  { %11 = vsyncpa [#allocation7], 0  ;;  %s439_s19 = smov 0  }
   0xd LB: > { %p19_p3 = scmp.lt.s32.totalorder %s397_s19, 0  ;;  %s20_s20 = ssub.s32 0, %s397_s19  ;;  %s397_s19 = sphi %s439_s19, %s18_s19  }
   0xe   : > { %s230_s21 = smin.u32 %s397_s19, %s20_s20  ;;  %s32_s0 = sld [smem:[#allocation5 + %s397_s19]] }
   0xf   : > { %s22_s22 = sand.u32 7, %s230_s21   ;;  %s39_s24 = scalar_lea.vmem [#allocation2], %s397_s19 }
  0x10   : > { %s23_s23 = ssub.s32 0, %s22_s22  ;;  %s48_s25 = sshll.u32 %s39_s24, 4  ;;  %s49_s25 = int_to_ptr.vmem [resolvable:$true] %s48_s25 }
  0x11   : > { %s517_s23 = smov (!%p19_p3, %s23_s23), %s22_s22  ;;  %s307_s7 = scalar_lea.hbm %s514_s1, 1024 }
  0x12   : > { %p232_p4 = scmp.lt.s32.totalorder %s517_s23, 0  ;;  %s29_s26 = sadd.s32 8, %s517_s23 }
  0x14   : > { %p33_p5 = scmp.gt.s32.totalorder %s32_s0, 0  ;;  %p233_p6 = scmp.lt.s32.totalorder %s32_s0, 63 }
  0x15   : > { %s519_s26 = smov (!%p232_p4, %s29_s26), %s517_s23 }
  0x16   : > { %s521_s0 = smov (!%p33_p5, %s32_s0), 0  ;;  %s40_s3 = scalar_lea.sflag [#allocation3], %s519_s26 }
  0x17   : > { %s523_s0 = smov (!%p233_p6, %s521_s0), 63 }
  0x18   : > { %s238_s27 = sshll.u32 %s523_s0, 4 }
  0x19   : > { %s38_s30 = scalar_lea.hbm %s514_s1, %s238_s27 }
  0x1a   : > { %s305_s4 = scalar_lea.hbm %s38_s30, 16  ;;  %p308_p8 = scmp.lt.u32.totalorder %s38_s30, %s514_s1 }
  0x1b   : > { %p306_p7 = scmp.ne.s32.totalorder %s38_s30, %s305_s4  ;;  %p309_p9 = scmp.lt.u32.totalorder %s307_s7, %s305_s4 }
  0x1c   : > { %p311_p11 = scmp.lt.u32.totalorder %s305_s4, %s38_s30 }
  0x1d   : > { %p310_p10 = por %p309_p9, %p308_p8 }
  0x1f   : > { %p312_p12 = por %p311_p11, %p310_p10 }
  0x21   : > { %p313_p13 = pnand %p312_p12, %p306_p7 }
  0x23   : > { %316 = shalt.err (!%p313_p13)  }
  0x24   : > { %s317_s12 = scalar_lea.vmem %s49_s25, 16  ;;  %s408_s13 = smov [#allocation2]  }
  0x25   : > { %p318_p0 = scmp.ne.s32.totalorder %s49_s25, %s317_s12  ;;  %s319_s14 = sshll.u32 %s408_s13, 4  ;;  %s465_s14 = int_to_ptr.vmem [resolvable:$false] %s319_s14 }
  0x26   : > { %s321_s15 = scalar_lea.vmem %s465_s14, 256  ;;  %p322_p1 = scmp.lt.s32.totalorder %s49_s25, %s465_s14 }
  0x27   : > { %p323_p2 = scmp.lt.s32.totalorder %s321_s15, %s317_s12 }
  0x29   : > { %p324_p3 = por %p323_p2, %p322_p1 }
  0x2b   : > { %p325_p4 = pnand %p324_p3, %p318_p0 }
  0x2d   : > { %328 = shalt.err (!%p325_p4)  }
  0x2e   : > { %51 = dma.hbm_to_vmem [thread:$0]  %s38_s30, 16, %s49_s25, %s40_s3 }
  0x2f   : > { %s18_s19 = sadd.s32 1, %s397_s19  }
  0x30   : > { %p15_p5 = scmp.ge.s32.totalorder %s18_s19, 8  }
  0x31   :  { %s474_s16 = smov (%p15_p5), 8  }
  0x32   :  { %17 = sbr.rel (!%p15_p5) target bundleno = 13 (0xd), region = 64 }
  0x39 LB: > { %s239_s17 = sadd.s32 4294967288, %s401_s16  ;;  %s401_s16 = sphi %s474_s16, %s57_s16  }
  0x3a   : > { %p59_p6 = scmp.lt.s32.totalorder %s239_s17, 0  ;;  %s60_s18 = ssub.s32 0, %s239_s17 }
  0x3b   : > { %s240_s20 = smin.u32 %s239_s17, %s60_s18 }
  0x3c   : > { %s62_s21 = sand.u32 7, %s240_s20  }
  0x3d   : > { %s63_s0 = ssub.s32 0, %s62_s21 }
  0x3e   : > { %s525_s0 = smov (!%p59_p6, %s63_s0), %s62_s21 }
  0x3f   : > { %p242_p7 = scmp.lt.s32.totalorder %s525_s0, 0  ;;  %s69_s22 = sadd.s32 8, %s525_s0 }
  0x41   : > { %s527_s22 = smov (!%p242_p7, %s69_s22), %s525_s0 }
  0x42   : > { %s71_s19 = scalar_lea.sflag [#allocation3], %s527_s22 }
  0x43   : > { %389 = dma.done.wait %s71_s19, 16 }
  0x44   : > { %390 = vsyncadd %s71_s19, 4294967280  ;;  %p75_p8 = scmp.lt.s32.totalorder %s401_s16, 0  ;;  %s76_s23 = ssub.s32 0, %s401_s16 }
  0x45   : > { %s88_s24 = sld [smem:[#allocation5 + %s401_s16]]  ;;  %s243_s25 = smin.u32 %s401_s16, %s76_s23 }
  0x46   : > { %s78_s26 = sand.u32 7, %s243_s25   ;;  %s95_s28 = scalar_lea.vmem [#allocation2], %s401_s16 }
  0x47   : > { %s79_s27 = ssub.s32 0, %s78_s26  ;;  %s104_s29 = sshll.u32 %s95_s28, 4  ;;  %s105_s29 = int_to_ptr.vmem [resolvable:$true] %s104_s29 }
  0x48   : > { %s529_s27 = smov (!%p75_p8, %s79_s27), %s78_s26 }
  0x49   : > { %p245_p9 = scmp.lt.s32.totalorder %s529_s27, 0  ;;  %s85_s30 = sadd.s32 8, %s529_s27 }
  0x4b   : > { %p89_p10 = scmp.gt.s32.totalorder %s88_s24, 0  ;;  %p246_p11 = scmp.lt.s32.totalorder %s88_s24, 63 }
  0x4c   : > { %s531_s30 = smov (!%p245_p9, %s85_s30), %s529_s27 }
  0x4d   : > { %s533_s24 = smov (!%p89_p10, %s88_s24), 0  ;;  %s96_s8 = scalar_lea.sflag [#allocation3], %s531_s30 }
  0x4e   : > { %s535_s24 = smov (!%p246_p11, %s533_s24), 63 }
  0x4f   : > { %s251_s3 = sshll.u32 %s535_s24, 4 }
  0x50   : > { %s94_s6 = scalar_lea.hbm %s514_s1, %s251_s3 }
  0x51   : > { %s329_s9 = scalar_lea.hbm %s94_s6, 16  ;;  %p332_p13 = scmp.lt.u32.totalorder %s94_s6, %s514_s1 }
  0x52   : > { %p330_p12 = scmp.ne.s32.totalorder %s94_s6, %s329_s9  ;;  %p333_p0 = scmp.lt.u32.totalorder %s307_s7, %s329_s9 }
  0x53   : > { %p335_p2 = scmp.lt.u32.totalorder %s329_s9, %s94_s6 }
  0x54   : > { %p334_p1 = por %p333_p0, %p332_p13 }
  0x56   : > { %p336_p3 = por %p335_p2, %p334_p1 }
  0x58   : > { %p337_p4 = pnand %p336_p3, %p330_p12 }
  0x5a   : > { %340 = shalt.err (!%p337_p4)  }
  0x5b   : > { %s341_s17 = scalar_lea.vmem %s105_s29, 16  ;;  %p346_p6 = scmp.lt.s32.totalorder %s105_s29, %s465_s14 }
  0x5c   : > { %p342_p5 = scmp.ne.s32.totalorder %s105_s29, %s341_s17  ;;  %p347_p7 = scmp.lt.s32.totalorder %s321_s15, %s341_s17 }
  0x5e   : > { %p348_p8 = por %p347_p7, %p346_p6 }
  0x60   : > { %p349_p9 = pnand %p348_p8, %p342_p5 }
  0x62   : > { %352 = shalt.err (!%p349_p9)  }
  0x63   : > { %107 = dma.hbm_to_vmem [thread:$0]  %s94_s6, 16, %s105_s29, %s96_s8 }
  0x64   : > { %s57_s16 = sadd.s32 1, %s401_s16  }
  0x65   : > { %p54_p10 = scmp.ge.s32.totalorder %s57_s16, 16  }
  0x66   :  { %s403_s18 = smov (%p54_p10), 8  }
  0x67   :  { %56 = sbr.rel (!%p54_p10) target bundleno = 57 (0x39), region = 75 }
  0x6e LB: > { %p114_p11 = scmp.lt.s32.totalorder %s405_s18, 0  ;;  %s115_s20 = ssub.s32 0, %s405_s18  ;;  %s405_s18 = sphi %s403_s18, %s113_s18  }
  0x6f   : > { %s252_s21 = smin.u32 %s405_s18, %s115_s20 }
  0x70   : > { %s117_s0 = sand.u32 7, %s252_s21  }
  0x71   : > { %s118_s22 = ssub.s32 0, %s117_s0 }
  0x72   : > { %s537_s22 = smov (!%p114_p11, %s118_s22), %s117_s0 }
  0x73   : > { %p254_p12 = scmp.lt.s32.totalorder %s537_s22, 0  ;;  %s124_s19 = sadd.s32 8, %s537_s22 }
  0x75   : > { %s539_s19 = smov (!%p254_p12, %s124_s19), %s537_s22 }
  0x76   : > { %s126_s23 = scalar_lea.sflag [#allocation3], %s539_s19 }
  0x77   : > { %391 = dma.done.wait %s126_s23, 16 }
  0x78   : > { %392 = vsyncadd %s126_s23, 4294967280  ;;  %s113_s18 = sadd.s32 1, %s405_s18  }
  0x79   : > { %p110_p13 = scmp.ge.s32.totalorder %s113_s18, 16  }
  0x7a   :  { %v130_v0 = vld [vmem:[#allocation2] sm:$0xff] (%p110_p13)  ;;  %v131_v1 = vld [vmem:[#allocation2 + $0x8] sm:$0xff] (%p110_p13)  ;;  %s409_s1 = smov (%p110_p13), [#allocation6]  }
  0x7b   :  { %112 = sbr.rel (!%p110_p13) target bundleno = 110 (0x6e), region = 86  ;;  %132 = vst [vmem:[#allocation6] sm:$0xff] (%p110_p13), %v130_v0  ;;  %133 = vst [vmem:[#allocation6 + $0x8] sm:$0xff] (%p110_p13), %v131_v1  ;;  %s139_s7 = sshll.u32 (%p110_p13), %s409_s1, 4  ;;  %s140_s7 = int_to_ptr.vmem [resolvable:$true] %s139_s7 }
  0x7c   :  { %s353_s14 = scalar_lea.vmem (%p110_p13), %s140_s7, 256  ;;  %p358_p1 = scmp.lt.s32.totalorder (%p110_p13), %s140_s7, %s140_s7 }
  0x7d   :  { %p354_p0 = scmp.ne.s32.totalorder (%p110_p13), %s140_s7, %s353_s14  ;;  %p359_p2 = scmp.lt.s32.totalorder (%p110_p13), %s353_s14, %s353_s14 }
  0x7f   :  { %p360_p3 = por (%p110_p13), %p359_p2, %p358_p1 }
  0x81   :  { %p361_p4 = pnand (%p110_p13), %p360_p3, %p354_p0 }
  0x83   :  { %364 = shalt.err (!%p361_p4)
}
  0x84   :  { %s365_s24 = scalar_lea.hbm %s515_s2, 256 }
  0x85   :  { %p366_p5 = scmp.ne.s32.totalorder %s515_s2, %s365_s24  ;;  %p369_p6 = scmp.lt.u32.totalorder %s365_s24, %s515_s2 }
  0x87   :  { %p371_p7 = pnand %p369_p6, %p366_p5 }
  0x89   :  { %374 = shalt.err (!%p371_p7)
}
  0x8a   :  { %s410_s29 = smov 128   ;;  %s411_s30 = smov 8  }
  0x8b   :  { %145 = dma.vmem_to_hbm [thread:$0]  %s140_s7, 256, %s515_s2, [#allocation7], %s410_s29, %s410_s29, %s411_s30  }
  0x8c   :  { %393 = dma.done.wait [#allocation7], 256  }
  0x8d   :  { %394 = vsyncadd [#allocation7], 4294967040 }
  0x8e   :  { %149 = vsyncpa [#allocation7], 1 }
  0x8f   :  { %150 = vsyncmov [#allocation3] }
  0x92   :  { %s151_s5 = vpop.sfrf %150 }
  0x93   :  { %p255_p8 = scmp.ne.s32.totalorder %s151_s5, 0 }
  0x95   :  { %155 = shalt.err (%p255_p8)  }
  0x96   :  { %157 = vsyncmov [#allocation3 + $0x1] }
  0x99   :  { %s158_s6 = vpop.sfrf %157 }
  0x9a   :  { %p256_p9 = scmp.ne.s32.totalorder %s158_s6, 0 }
  0x9c   :  { %162 = shalt.err (%p256_p9)  }
  0x9d   :  { %164 = vsyncmov [#allocation3 + $0x2] }
  0xa0   :  { %s165_s8 = vpop.sfrf %164 }
  0xa1   :  { %p257_p10 = scmp.ne.s32.totalorder %s165_s8, 0 }
  0xa3   :  { %169 = shalt.err (%p257_p10)  }
  0xa4   :  { %171 = vsyncmov [#allocation3 + $0x3] }
  0xa7   :  { %s172_s9 = vpop.sfrf %171 }
  0xa8   :  { %p258_p11 = scmp.ne.s32.totalorder %s172_s9, 0 }
  0xaa   :  { %176 = shalt.err (%p258_p11)  }
  0xab   :  { %178 = vsyncmov [#allocation3 + $0x4] }
  0xae   :  { %s179_s2 = vpop.sfrf %178 }
  0xaf   :  { %p259_p12 = scmp.ne.s32.totalorder %s179_s2, 0 }
  0xb1   :  { %183 = shalt.err (%p259_p12)  }
  0xb2   :  { %185 = vsyncmov [#allocation3 + $0x5] }
  0xb5   :  { %s186_s10 = vpop.sfrf %185 }
  0xb6   :  { %p260_p13 = scmp.ne.s32.totalorder %s186_s10, 0 }
  0xb8   :  { %190 = shalt.err (%p260_p13)  }
  0xb9   :  { %192 = vsyncmov [#allocation3 + $0x6] }
  0xbc   :  { %s193_s11 = vpop.sfrf %192 }
  0xbd   :  { %p261_p0 = scmp.ne.s32.totalorder %s193_s11, 0 }
  0xbf   :  { %197 = shalt.err (%p261_p0)  }
  0xc0   :  { %199 = vsyncmov [#allocation3 + $0x7] }
  0xc3   :  { %s200_s12 = vpop.sfrf %199 }
  0xc4   :  { %p262_p1 = scmp.ne.s32.totalorder %s200_s12, 0 }
  0xc6   :  { %204 = shalt.err (%p262_p1)  }

</bundles_post_ra>
